<compile_context>
chip_gen: v5e
topology: v5e:2x2
jax: 0.10.0
libtpu: 0.0.40
codegen_flags: <defaults>
</compile_context>

<pallas_src>
import functools

import jax
import jax.numpy as jnp
from jax.experimental import pallas as pl
from jax.experimental.pallas import tpu as pltpu


# ----------------------------- kernel ------------------------------------- #

def _drop_stripes_kernel(stripes_ref, x_ref, o_ref, *, dim, freq_bins,
                         time_steps, stripes_num, batch_block,
                         lanes_total, chunk_lanes):
    """stripes_ref: SMEM int32 1-D, length B*stripes_num*2, layout
       [b, s, (bgn, dist)] row-major.
    x_ref / o_ref: VMEM (batch_block, rows, chunk_lanes) window of the
       row-major-flattened (C, T, F) slab."""
    bb = pl.program_id(0)            # batch-block index
    cc = pl.program_id(1)            # lane-chunk index
    rows = x_ref.shape[1]
    lc = x_ref.shape[2]

    # Flat row-major index of each element within its (C, T, F) slab:
    #   flat = c*T*F + t*F + f  =  row*lanes_total + cc*chunk_lanes + lane.
    row = jax.lax.broadcasted_iota(jnp.int32, (rows, lc), 0)
    lane = jax.lax.broadcasted_iota(jnp.int32, (rows, lc), 1)
    flat = row * lanes_total + (cc * chunk_lanes + lane)

    if dim == 2:                       # stripes along time
        modulus = time_steps * freq_bins
        scale = freq_bins              # compare against [bgn*F, (bgn+dist)*F)
    else:                              # stripes along freq
        modulus = freq_bins
        scale = 1
    if rows * lanes_total > modulus:   # one modulo per grid step, usually a
        idx = flat % modulus           # power of two (-> AND); skipped when the
    else:                              # whole slab lies inside one period
        idx = flat                     # (e.g. C == 1 for dim == 2).

    zero = jnp.zeros((), dtype=x_ref.dtype)

    for lb in range(batch_block):                        # small static unroll
        b = bb * batch_block + lb
        base = b * (2 * stripes_num)
        drop = None
        for s in range(stripes_num):                     # static unroll
            bgn = stripes_ref[base + 2 * s] * scale      # scalar-unit math
            end = bgn + stripes_ref[base + 2 * s + 1] * scale
            hit = (idx >= bgn) & (idx < end)
            drop = hit if drop is None else (drop | hit)
        if drop is None:
            o_ref[lb] = x_ref[lb]
        else:
            # Assignment semantics (exact zeros, no 0*NaN propagation).
            o_ref[lb] = jnp.where(drop, zero, x_ref[lb])


# ----------------------------- wrapper ------------------------------------ #

def _sample_stripes(key, batch, total_width, drop_width, stripes_num):
    """Exact-integer sampler matching the PyTorch module's distribution:
    distance ~ U{0..drop_width-1}, bgn ~ U{0..total_width-distance-1}."""
    k_dist, k_bgn = jax.random.split(key)
    distance = jax.random.randint(k_dist, (batch, stripes_num), 0, drop_width,
                                  dtype=jnp.int32)
    bgn = jax.random.randint(k_bgn, (batch, stripes_num), 0,
                             total_width - distance, dtype=jnp.int32)
    return jnp.stack([bgn, distance], axis=-1)           # (B, stripes_num, 2)


def _round_up(n, m):
    return -(-n // m) * m


def _largest_divisor_leq(n, limit):
    d = max(1, min(n, limit))
    while n % d:
        d -= 1
    return d


def _choose_layout(C, T, F, itemsize):
    """Pick (rows, lanes) with rows*lanes == C*T*F, lanes % 128 == 0 and
    rows >= the dtype sublane packing, so VMEM blocks hold dense vregs."""
    slab = C * T * F
    min_rows = 8 * max(1, 4 // itemsize)        # 8 f32 / 16 bf16 / 32 int8
    for want_rows in (min_rows, 8):
        max_m = slab // (128 * want_rows)
        for m in range(max_m, 0, -1):           # prefer the widest lane dim
            if slab % (128 * m) == 0:
                return slab // (128 * m), 128 * m
    # No clean factorisation: pick the natural view that pads least.
    def padded(rl):
        r, l = rl
        return _round_up(r, min_rows) * _round_up(l, 128)
    return min([(C * T, F), (C, T * F)], key=padded)


def drop_stripes(x, key, *, dim, drop_width, stripes_num, training=True,
                 target_block_bytes=2 * 1024 * 1024, donate_input=False):
    """JAX/Pallas equivalent of DropStripes.forward.

    x: (batch, channels, time_steps, freq_bins); `key` controls stripe
    placement (replaces torch's global RNG)."""
    assert x.ndim == 4
    assert dim in (2, 3)
    if not training or stripes_num == 0:
        return x

    B, C, T, F = x.shape
    total_width = x.shape[dim]
    assert 1 <= drop_width <= total_width

    # Random stripe parameters (tiny; plain-JAX glue -> SMEM scalar prefetch).
    stripes = _sample_stripes(key, B, total_width, drop_width, stripes_num)
    stripes_flat = stripes.reshape(-1).astype(jnp.int32)

    # ---- dense-vreg layout for each batch slab ------------------------------
    itemsize = jnp.dtype(x.dtype).itemsize
    min_rows = 8 * max(1, 4 // itemsize)
    rows, lanes = _choose_layout(C, T, F, itemsize)
    x3 = x.reshape(B, rows, lanes)               # row-major reshape

    # ---- block sizing with *padded* bytes -----------------------------------
    padded_slab = _round_up(rows, min_rows) * _round_up(lanes, 128) * itemsize

    if padded_slab <= target_block_bytes:
        # Block over batch only.  Cap the static unroll at 8 and keep >= 2
        # grid steps when possible (DMA overlap / both v7x TensorCores busy).
        bb_limit = min(8, max(1, target_block_bytes // padded_slab))
        Bb = _largest_divisor_leq(B, bb_limit)
        if B > 1 and B // Bb < 2:
            Bb = _largest_divisor_leq(B, max(1, B // 2))
        chunk = lanes
    else:
        # One batch element per block; tile the lane axis so double-buffered
        # in+out blocks stay well inside scoped VMEM (mandatory on v7x).
        Bb = 1
        if lanes % 128 == 0:
            cap = max(128, (target_block_bytes //
                            (_round_up(rows, min_rows) * itemsize)) // 128 * 128)
            d = _largest_divisor_leq(lanes // 128, cap // 128)
            chunk = 128 * d
        else:
            # TODO(synk): ragged slabs bigger than the block target stay one
            # block; add a masked lane-edge tiling if this ever matters.
            chunk = lanes
    n_chunks = lanes // chunk
    grid = (B // Bb, n_chunks)

    kernel = functools.partial(
        _drop_stripes_kernel, dim=dim, freq_bins=F, time_steps=T,
        stripes_num=stripes_num, batch_block=Bb,
        lanes_total=lanes, chunk_lanes=chunk)

    block = (Bb, rows, chunk)
    out3 = pl.pallas_call(
        kernel,
        out_shape=jax.ShapeDtypeStruct((B, rows, lanes), x.dtype),
        grid_spec=pltpu.PrefetchScalarGridSpec(
            num_scalar_prefetch=1,                 # stripe params land in SMEM
            grid=grid,
            in_specs=[pl.BlockSpec(block, lambda bb, cc, s: (bb, 0, cc))],
            out_specs=pl.BlockSpec(block, lambda bb, cc, s: (bb, 0, cc)),
        ),
        compiler_params=pltpu.CompilerParams(
            # Both axes are independent.  On v7x, if xprof shows one idle
            # TensorCore, switch the first axis to pltpu.CORE_PARALLEL.
            dimension_semantics=("parallel", "parallel"),
            vmem_limit_bytes=32 * 1024 * 1024),
        cost_estimate=pl.CostEstimate(
            flops=B * C * T * F * (2 * stripes_num + 1),
            transcendentals=0,
            bytes_accessed=2 * B * C * T * F * itemsize),
        # donate_input reuses the input HBM slab for the output
        # (operand index 1 = x3; index 0 is the scalar-prefetch operand).
        input_output_aliases=({1: 0} if donate_input else {}),
    )(stripes_flat, x3)

    return out3.reshape(B, C, T, F)


# ----------------------------- reference & test ---------------------------- #

def _reference(x, stripes, dim):
    """Pure-JAX reference with the same stripe parameters."""
    B = x.shape[0]
    total = x.shape[dim]
    idx = jnp.arange(total)
    out = x
    for b in range(B):
        slab = out[b]                                    # (C, T, F)
        for s in range(stripes.shape[1]):
            bgn = stripes[b, s, 0]
            dist = stripes[b, s, 1]
            keep = ~((idx >= bgn) & (idx < bgn + dist))
            keep3 = keep[None, :, None] if dim == 2 else keep[None, None, :]
            slab = jnp.where(keep3, slab, 0)
        out = out.at[b].set(slab)
    return out


if __name__ == "__main__":
    root = jax.random.PRNGKey(0)
    k_data, k_t, k_f, k_b, k_c, k_r = jax.random.split(root, 6)

    drop_width, stripes_num = 4, 2

    # (1) f32, time stripes (dim=2), aligned dense layout (rows=8, lanes=128).
    B, C, T, F = 2, 4, 16, 16
    x = jax.random.normal(k_data, (B, C, T, F), dtype=jnp.float32)
    y = jax.block_until_ready(
        drop_stripes(x, k_t, dim=2, drop_width=drop_width,
                     stripes_num=stripes_num))
    st = _sample_stripes(k_t, B, T, drop_width, stripes_num)
    assert jnp.array_equal(y, _reference(x, st, 2)), "dim=2 f32 mismatch"

    # (2) f32, freq stripes (dim=3).
    y = jax.block_until_ready(
        drop_stripes(x, k_f, dim=3, drop_width=drop_width,
                     stripes_num=stripes_num))
    st = _sample_stripes(k_f, B, F, drop_width, stripes_num)
    assert jnp.array_equal(y, _reference(x, st, 3)), "dim=3 f32 mismatch"

    # (3) bf16 input handled natively (no upcast in the wrapper).
    xb = x.astype(jnp.bfloat16)
    y = jax.block_until_ready(
        drop_stripes(xb, k_b, dim=2, drop_width=drop_width,
                     stripes_num=stripes_num))
    st = _sample_stripes(k_b, B, T, drop_width, stripes_num)
    assert jnp.array_equal(y, _reference(xb, st, 2)), "bf16 mismatch"

    # (4) lane-chunked path (slab larger than the block target).
    xc = jax.random.normal(k_data, (2, 1, 32, 128), dtype=jnp.float32)
    y = jax.block_until_ready(
        drop_stripes(xc, k_c, dim=2, drop_width=8, stripes_num=2,
                     target_block_bytes=4096))
    st = _sample_stripes(k_c, 2, 32, 8, 2)
    assert jnp.array_equal(y, _reference(xc, st, 2)), "chunked mismatch"

    # (5) ragged fallback layout (no clean 128-lane factorisation).
    xr = jax.random.normal(k_data, (2, 1, 10, 24), dtype=jnp.float32)
    y = jax.block_until_ready(
        drop_stripes(xr, k_r, dim=3, drop_width=5, stripes_num=2))
    st = _sample_stripes(k_r, 2, 24, 5, 2)
    assert jnp.array_equal(y, _reference(xr, st, 3)), "ragged mismatch"

    # (6) eval-mode path is identity.
    y_eval = drop_stripes(x, k_t, dim=2, drop_width=drop_width,
                          stripes_num=stripes_num, training=False)
    assert jnp.array_equal(y_eval, x)

    print("KERNEL_OK")
</pallas_src>

<mosaic_0001>
module attributes {stable_mosaic.version = 11 : i64} {
  func.func @_drop_stripes_kernel(%arg0: i32, %arg1: i32, %arg2: memref<8xi32, #tpu.memory_space<smem>>, %arg3: memref<1x8x128xf32, #tpu.memory_space<vmem>>, %arg4: memref<1x8x128xf32, #tpu.memory_space<vmem>>) attributes {dimension_semantics = [#tpu.dimension_semantics<parallel>, #tpu.dimension_semantics<parallel>], iteration_bounds = array<i64: 2, 1>, scalar_prefetch = 1 : i64, scratch_operands = 0 : i64, tpu.core_type = #tpu.core_type<tc>, window_params = [{transform_indices = @transform_0, window_bounds = array<i64: 1, 8, 128>}, {transform_indices = @transform_1, window_bounds = array<i64: 1, 8, 128>}]} {
    %0 = tpu.iota {dimensions = array<i32: 0>} : vector<8x128xi32>
    %1 = tpu.iota {dimensions = array<i32: 1>} : vector<8x128xi32>
    %c128_i32 = arith.constant 128 : i32
    %2 = vector.broadcast %c128_i32 : i32 to vector<8x128xi32>
    %3 = arith.muli %0, %2 : vector<8x128xi32>
    %c128_i32_0 = arith.constant 128 : i32
    %4 = arith.muli %arg1, %c128_i32_0 : i32
    %5 = vector.broadcast %4 : i32 to vector<8x128xi32>
    %6 = arith.addi %5, %1 : vector<8x128xi32>
    %7 = arith.addi %3, %6 : vector<8x128xi32>
    %c256_i32 = arith.constant 256 : i32
    %c0_i32 = arith.constant 0 : i32
    %8 = arith.cmpi eq, %c256_i32, %c0_i32 : i32
    %c1_i32 = arith.constant 1 : i32
    %9 = arith.select %8, %c1_i32, %c256_i32 : i32
    %10 = vector.broadcast %9 : i32 to vector<8x128xi32>
    %11 = arith.remsi %7, %10 : vector<8x128xi32>
    %c0_i32_1 = arith.constant 0 : i32
    %12 = vector.broadcast %c0_i32_1 : i32 to vector<8x128xi32>
    %13 = arith.cmpi ne, %11, %12 : vector<8x128xi32>
    %c0_i32_2 = arith.constant 0 : i32
    %14 = vector.broadcast %c0_i32_2 : i32 to vector<8x128xi32>
    %15 = arith.cmpi slt, %11, %14 : vector<8x128xi32>
    %c0_i32_3 = arith.constant 0 : i32
    %16 = arith.cmpi slt, %9, %c0_i32_3 : i32
    %17 = vector.broadcast %16 : i1 to vector<8x128xi1>
    %18 = vector.broadcast %17 : vector<8x128xi1> to vector<8x128xi1>
    %19 = arith.xori %15, %18 : vector<8x128xi1>
    %20 = arith.andi %19, %13 : vector<8x128xi1>
    %21 = vector.broadcast %9 : i32 to vector<8x128xi32>
    %22 = arith.addi %11, %21 : vector<8x128xi32>
    %23 = arith.select %20, %22, %11 : vector<8x128xi1>, vector<8x128xi32>
    %c1_i32_4 = arith.constant 1 : i32
    %24 = arith.muli %arg0, %c1_i32_4 : i32
    %c0_i32_5 = arith.constant 0 : i32
    %25 = arith.addi %24, %c0_i32_5 : i32
    %c4_i32 = arith.constant 4 : i32
    %26 = arith.muli %25, %c4_i32 : i32
    %c0_i32_6 = arith.constant 0 : i32
    %27 = arith.addi %26, %c0_i32_6 : i32
    %28 = arith.index_cast %27 : i32 to index
    %29 = memref.load %arg2[%28] : memref<8xi32, #tpu.memory_space<smem>>
    %c16_i32 = arith.constant 16 : i32
    %30 = arith.muli %29, %c16_i32 : i32
    %c0_i32_7 = arith.constant 0 : i32
    %31 = arith.addi %26, %c0_i32_7 : i32
    %c1_i32_8 = arith.constant 1 : i32
    %32 = arith.addi %31, %c1_i32_8 : i32
    %33 = arith.index_cast %32 : i32 to index
    %34 = memref.load %arg2[%33] : memref<8xi32, #tpu.memory_space<smem>>
    %c16_i32_9 = arith.constant 16 : i32
    %35 = arith.muli %34, %c16_i32_9 : i32
    %36 = arith.addi %30, %35 : i32
    %37 = vector.broadcast %30 : i32 to vector<8x128xi32>
    %38 = arith.cmpi sge, %23, %37 : vector<8x128xi32>
    %39 = vector.broadcast %36 : i32 to vector<8x128xi32>
    %40 = arith.cmpi slt, %23, %39 : vector<8x128xi32>
    %41 = arith.andi %38, %40 : vector<8x128xi1>
    %c2_i32 = arith.constant 2 : i32
    %42 = arith.addi %26, %c2_i32 : i32
    %43 = arith.index_cast %42 : i32 to index
    %44 = memref.load %arg2[%43] : memref<8xi32, #tpu.memory_space<smem>>
    %c16_i32_10 = arith.constant 16 : i32
    %45 = arith.muli %44, %c16_i32_10 : i32
    %c2_i32_11 = arith.constant 2 : i32
    %46 = arith.addi %26, %c2_i32_11 : i32
    %c1_i32_12 = arith.constant 1 : i32
    %47 = arith.addi %46, %c1_i32_12 : i32
    %48 = arith.index_cast %47 : i32 to index
    %49 = memref.load %arg2[%48] : memref<8xi32, #tpu.memory_space<smem>>
    %c16_i32_13 = arith.constant 16 : i32
    %50 = arith.muli %49, %c16_i32_13 : i32
    %51 = arith.addi %45, %50 : i32
    %52 = vector.broadcast %45 : i32 to vector<8x128xi32>
    %53 = arith.cmpi sge, %23, %52 : vector<8x128xi32>
    %54 = vector.broadcast %51 : i32 to vector<8x128xi32>
    %55 = arith.cmpi slt, %23, %54 : vector<8x128xi32>
    %56 = arith.andi %53, %55 : vector<8x128xi1>
    %57 = arith.ori %41, %56 : vector<8x128xi1>
    %c0 = arith.constant 0 : index
    %c0_14 = arith.constant 0 : index
    %c0_15 = arith.constant 0 : index
    %58 = vector.load %arg3[%c0, %c0_14, %c0_15] : memref<1x8x128xf32, #tpu.memory_space<vmem>>, vector<1x8x128xf32>
    %59 = vector.shape_cast %58 : vector<1x8x128xf32> to vector<8x128xf32>
    %cst = arith.constant 0.000000e+00 : f32
    %60 = vector.broadcast %cst : f32 to vector<8x128xf32>
    %61 = arith.select %57, %60, %59 : vector<8x128xi1>, vector<8x128xf32>
    %c0_16 = arith.constant 0 : index
    %c0_17 = arith.constant 0 : index
    %c0_18 = arith.constant 0 : index
    %62 = vector.load %arg4[%c0_16, %c0_17, %c0_18] : memref<1x8x128xf32, #tpu.memory_space<vmem>>, vector<1x8x128xf32>
    %63 = vector.shape_cast %62 : vector<1x8x128xf32> to vector<8x128xf32>
    %64 = vector.shape_cast %61 : vector<8x128xf32> to vector<1x8x128xf32>
    tpu.vector_store %arg4[%c0_16, %c0_17, %c0_18], %64 {strides = array<i32>} : memref<1x8x128xf32, #tpu.memory_space<vmem>>, vector<1x8x128xf32>,
    return
  }
  func.func @transform_0(%arg0: i32, %arg1: i32, %arg2: memref<8xi32, #tpu.memory_space<smem>>) -> (i32, i32, i32) {
    %c0_i32 = arith.constant 0 : i32
    %c0_i32_0 = arith.constant 0 : i32
    return %arg0, %c0_i32, %arg1 : i32, i32, i32
  }
  func.func @transform_1(%arg0: i32, %arg1: i32, %arg2: memref<8xi32, #tpu.memory_space<smem>>) -> (i32, i32, i32) {
    %c0_i32 = arith.constant 0 : i32
    %c0_i32_0 = arith.constant 0 : i32
    return %arg0, %c0_i32, %arg1 : i32, i32, i32
  }
}

</mosaic_0001>

<bundles_post_ra>
// kernel: tpu_custom_call.1
= control target key start
LH: loop header
LB: loop body
LE: loop exit
PB: predicated region body
PF: predicated region fallthrough
CT: control target
= control target key end

     0   :  { %s515_s12 = smov [#allocation3]   ;;  %s662_s0 = inlined_call_operand.hbm [shape: s32[8], index: 0, kind: input, shape index: {}]   ;;  %s663_s1 = inlined_call_operand.hbm [shape: f32[2,8,128], index: 1, kind: input, shape index: {}]   ;;  %s664_s2 = inlined_call_operand.hbm [shape: f32[2,8,128], index: 2, kind: output, shape index: {}]  }
   0x1   :  { %s8_s11 = sshll.u32 %s662_s0, 4  ;;  %s9_s11 = int_to_ptr.hbm [resolvable:$true] %s8_s11 }
   0x2   :  { %11 = dma.hbm_to_smem %s9_s11, 16, %s515_s12, [#allocation2] }
   0x3   :  { %481 = dma.done.wait [#allocation2], 16 }
   0x4   :  { %482 = vsyncadd [#allocation2], 4294967280 }
   0x5   :  { %14 = sfence }
   0x6   :  { %15 = vsyncpa [#allocation5], 0 }
   0x7   :  { %17 = vsyncpa [#allocation5 + $0x1], 0 }
   0x8   :  { %18 = vsyncpa [#allocation6], 0 }
   0x9   :  { %20 = vsyncpa [#allocation6 + $0x1], 0  ;;  %s534_s13 = smov 0   ;;  %s536_s14 = smov 0  }
   0xa   :  { %s538_s15 = smov 0   ;;  %s540_s16 = smov 0  }
   0xb   :  { %s542_s17 = smov 0   ;;  %s544_s0 = smov 0  }
   0xc LB: > { %s306_s18 = sadd.s32 4294967295, %s513_s0   ;;  %s307_s19 = sadd.s32 4294967294, %s513_s0   ;;  %s513_s0 = sphi %s544_s0, %s26_s0   ;;  %s509_s17 = sphi %s542_s17, %s673_s17   ;;  %s505_s16 = sphi %s540_s16, %s672_s16   ;;  %s501_s15 = sphi %s538_s15, %s671_s15   ;;  %s497_s14 = sphi %s536_s14, %s670_s14   ;;  %s493_s13 = sphi %s534_s13, %s669_s13  }
   0xd   : > { %s38_s20 = sadd.s32 1, %s509_s17  ;;  %s47_s21 = sadd.s32 1, %s501_s15 }
   0xe   : > { %p40_p0 = scmp.ge.s32.totalorder %s38_s20, 2  ;;  %p54_p1 = scmp.ne.s32.totalorder %s501_s15, %s497_s14 }
   0xf   : > { %p55_p2 = scmp.eq.s32.totalorder %s513_s0, 0  ;;  %p60_p3 = scmp.ne.s32.totalorder %s497_s14, %s493_s13 }
  0x10   : > { %s675_s20 = smov (%p40_p0, %s38_s20), 0  ;;  %p61_p5 = scmp.eq.s32.totalorder %s306_s18, 0 }
  0x11   : > { %p575_p4 = por %p55_p2, %p54_p1  ;;  %s42_s23 = ssub.s32 %s509_s17, %s675_s20 }
  0x12   : > { %p86_p6 = scmp.eq.s32.totalorder %s306_s18, 1  ;;  %p45_p7 = scmp.eq.s32.totalorder %s42_s23, 0 }
  0x13   : > { %p581_p8 = por %p61_p5, %p60_p3  ;;  %p92_p10 = scmp.eq.s32.totalorder %s307_s19, 1 }
  0x14   : > { %p585_p9 = por %p86_p6, %p54_p1  ;;  %p309_p12 = scmp.ge.s32.totalorder %s513_s0, 2 }
  0x15   : > { %s590_s26 = scalar_select %p45_p7, %s501_s15, %s47_s21  }
  0x16   : > { %p592_p11 = por %p92_p10, %p60_p3  ;;  %p336_p13 = scmp.lt.s32.totalorder %s513_s0, 2 }
  0x17   : > { %s112_s28 = sand.u32 1, %s501_s15   ;;  %s311_s30 = sshll.u32 %s509_s17, 3 }
  0x18   : > { %s310_s29 = sshll.u32 %s112_s28, 3  ;;  %s121_s5 = scalar_lea.hbm %s663_s1, %s311_s30 }
  0x19   : > { %s116_s6 = scalar_lea.vmem [#allocation4], %s310_s29  ;;  %s123_s8 = sshll.u32 %s121_s5, 4  ;;  %s124_s8 = int_to_ptr.hbm [resolvable:$true] %s123_s8 }
  0x1a   : > { %s125_s7 = sshll.u32 %s116_s6, 4  ;;  %p329_p0 = pnand %p336_p13, %p575_p4  ;;  %s126_s7 = int_to_ptr.vmem [resolvable:$true] %s125_s7 }
  0x1b   : > { %p312_p1 = scmp.ge.s32.totalorder %s513_s0, 1  ;;  %p130_p2 = scmp.lt.s32.totalorder %s513_s0, 3 }
  0x1c   : > { %s113_s9 = scalar_lea.sflag [#allocation5], %s112_s28 }
  0x1d   : > { %331 = dma.hbm_to_vmem [thread:$0]  (!%p329_p0), %s124_s8, 128, %s126_s7, %s113_s9  }
  0x1e   : > { %p131_p3 = pnand %p312_p1, %p130_p2 }
  0x1f   : > { %s608_s10 = sand.u32 (!%p131_p3), 1, %s497_s14  }
  0x20   : > { %134 = sbr.rel (%p131_p3) target bundleno = 65 (0x41), region = 24  ;;  %s313_s11 = sshll.u32 (!%p131_p3), %s608_s10, 3 }
  0x21   : > { %s137_s12 = scalar_lea.sflag (!%p131_p3), [#allocation5], %s608_s10  ;;  %s614_s18 = scalar_lea.vmem (!%p131_p3), [#allocation4], %s313_s11 }
  0x25   : > { %484 = dma.done.wait (%p581_p8), %s137_s12, 128  }
  0x26   : > { %486 = vsyncadd (%p581_p8), %s137_s12, 4294967168  ;;  %v160_v0 = vlaneseq  ;;  %s315_s19 = sshll.u32 %s505_s16, 2  ;;  %s321_s9 = sshll.u32 %s505_s16, 3  ;;  %v206_v16 = vld [vmem:[%s614_s18] sm:$0xff] }
  0x27   : > { %s182_s21 = sld [smem:[#allocation3 + %s315_s19]]  ;;  %s184_s22 = sadd.s32 1, %s315_s19 }
  0x28   : > { %v161_v1 = vshrl.u32 %v160_v0, 7  ;;  %v163_v2 = vand.u32 127, %v160_v0  ;;  %s185_s23 = sld [smem:[#allocation3 + %s184_s22]]  ;;  %s193_s28 = sadd.s32 2, %s315_s19 }
  0x29   : > { %s194_s29 = sld [smem:[#allocation3 + %s193_s28]]  ;;  %s196_s30 = sadd.s32 3, %s315_s19 }
  0x2a   : > { %v164_v3 = vmul.u32 128, %v161_v1  ;;  %s197_s3 = sld [smem:[#allocation3 + %s196_s30]]  ;;  %s159_s22 = scalar_lea.vmem [#allocation7], %s313_s11 }
  0x2b   : > { %s210_s28 = scalar_lea.sflag [#allocation6], %s608_s10 }
  0x2c   : > { %v168_v4 = vadd.s32 %v164_v3, %v163_v2 }
  0x2d   : > { %s316_s4 = sshll.u32 %s182_s21, 4  ;;  %s221_s21 = scalar_lea.hbm %s664_s2, %s321_s9 }
  0x2e   : > { %vm169_vm0 = vcmp.lt.s32.totalorder %v168_v4, 0  ;;  %v170_v5 = vsub.s32 0, %v168_v4  ;;  %s317_s24 = sshll.u32 %s185_s23, 4  ;;  %v188_v10 = vstv %s316_s4  ;;  %s223_s23 = sshll.u32 %s159_s22, 4  ;;  %s224_s23 = int_to_ptr.vmem [resolvable:$true] %s223_s23 }
  0x2f   : > { %s318_s5 = sshll.u32 %s194_s29, 4  ;;  %s187_s7 = sadd.s32 %s317_s24, %s316_s4 }
  0x30   : > { %v171_v6 = vsel %vm169_vm0, %v170_v5, %v168_v4  ;;  %s319_s6 = sshll.u32 %s197_s3, 4  ;;  %v190_v11 = vstv %s187_s7  ;;  %v200_v12 = vstv %s318_s5  ;;  %s225_s16 = sshll.u32 %s221_s21, 4  ;;  %s226_s16 = int_to_ptr.hbm [resolvable:$true] %s225_s16 }
  0x31   : > { %v173_v7 = vand.u32 255, %v171_v6  ;;  %s199_s8 = sadd.s32 %s319_s6, %s318_s5  ;;  %s443_s29 = sshra.s32 %s226_s16, 4  ;;  %s444_s29 = int_to_ptr.hbm [resolvable:$true] %s443_s29 }
  0x32   : > { %v202_v14 = vstv %s199_s8  ;;  %s445_s30 = scalar_lea.hbm %s444_s29, 8  ;;  %s449_s4 = scalar_lea.hbm %s664_s2, 16 }
  0x33   : > { %v174_v8 = vsub.s32 0, %v173_v7  ;;  %p446_p4 = scmp.ne.s32.totalorder %s444_s29, %s445_s30  ;;  %p450_p7 = scmp.lt.s32.totalorder %s444_s29, %s664_s2 }
  0x34   : > { %p451_p8 = scmp.lt.s32.totalorder %s449_s4, %s445_s30 }
  0x35   : > { %v175_v9 = vsel %vm169_vm0, %v174_v8, %v173_v7  ;;  %p447_p5 = pnand %p446_p4, %p585_p9 }
  0x36   : > { %vm176_vm1 = vcmp.ne.s32.totalorder %v175_v9, 0  ;;  %vm177_vm2 = vcmp.lt.s32.totalorder %v175_v9, 0  ;;  %v179_v13 = vadd.s32 256, %v175_v9  ;;  %p452_p10 = por %p451_p8, %p450_p7 }
  0x37   : > { %vm178_vm3 = vmand %vm177_vm2, %vm176_vm1  ;;  %p448_p6 = pneg %p447_p5 }
  0x38   : > { %v180_v15 = vsel %vm178_vm3, %v179_v13, %v175_v9 }
  0x39   : > { %vm189_vm4 = vcmp.ge.s32.totalorder %v180_v15, %v188_v10  ;;  %vm191_vm5 = vcmp.lt.s32.totalorder %v180_v15, %v190_v11  ;;  %vm201_vm6 = vcmp.ge.s32.totalorder %v180_v15, %v200_v12  ;;  %vm203_vm7 = vcmp.lt.s32.totalorder %v180_v15, %v202_v14  ;;  %p453_p13 = pnand %p452_p10, %p448_p6 }
  0x3a   : > { %vm192_vm8 = vmand %vm189_vm4, %vm191_vm5 }
  0x3b   : > { %vm204_vm9 = vmand %vm201_vm6, %vm203_vm7 }
  0x3c   : > { %vm205_vm10 = vmor %vm192_vm8, %vm204_vm9 }
  0x3d   : > { %v207_v17 = vsel %vm205_vm10, 0.0, %v206_v16 }
  0x3e   : > { %208 = vst [vmem:[%s159_s22] sm:$0xff] %v207_v17 }
  0x3f   : > { %456 = shalt.err (!%p453_p13)
}
  0x40   : > { %326 = dma.vmem_to_hbm [thread:$0]  (%p585_p9), %s224_s23, 128, %s226_s16, %s210_s28  }
  0x41 PF: > { %s237_s10 = sand.u32 1, %s493_s13   ;;  %p333_p0 = pnand %p309_p12, %p592_p11 }
  0x42   : > { %s238_s5 = scalar_lea.sflag [#allocation6], %s237_s10 }
  0x43   : > { %p334_p1 = pneg %p333_p0 }
  0x45   : > { %488 = dma.done.wait (%p334_p1), %s238_s5, 128  }
  0x46   : > { %490 = vsyncadd (%p334_p1), %s238_s5, 4294967168  ;;  %s26_s0 = sadd.s32 1, %s513_s0   ;;  %s669_s13 = smov %s497_s14 }
  0x47   : > { %p23_p2 = scmp.ge.s32.totalorder %s26_s0, 4   ;;  %s670_s14 = smov %s501_s15 }
  0x48   : > { %s671_s15 = smov %s590_s26  ;;  %s672_s16 = smov %s509_s17 }
  0x49   : > { %s673_s17 = smov %s675_s20  ;;  %25 = sbr.rel (!%p23_p2) target bundleno = 12 (0xc), region = 69 }
  0x4e   :  { %244 = vsyncpa [#allocation5], 1 }
  0x4f   :  { %246 = vsyncpa [#allocation5 + $0x1], 1 }
  0x50   :  { %247 = vsyncpa [#allocation6], 1 }
  0x51   :  { %249 = vsyncpa [#allocation6 + $0x1], 1 }

</bundles_post_ra>
